<compile_context>
chip_gen: v7x
topology: tpu7x:2x2x1
jax: 0.10.0
libtpu: 0.0.40
codegen_flags: <defaults>
</compile_context>

<pallas_src>
import jax
import jax.numpy as jnp
from jax.experimental import pallas as pl
from jax.experimental.pallas import tpu as pltpu


def _graphsage_maxpool_kernel(x_ref, a_ref, wp_ref, bp_ref,
                              wn_ref, ws_ref, bs_ref, bn_ref, o_ref):
    # Per-grid-step (one batch element) views:
    #   x_ref : (1, N, C)   node features
    #   a_ref : (1, N, N)   dense adjacency
    #   wp_ref: (C, C)   bp_ref: (1, C)   pooling transform
    #   wn_ref: (C, H)   ws_ref: (C, H)   neighbor / self weights
    #   bs_ref: (1, H)   bn_ref: (1, H)   biases (paired exactly as in the torch code)
    #   o_ref : (1, N, 2H)
    x = x_ref[0].astype(jnp.float32)          # (N, C)
    a = a_ref[0].astype(jnp.float32)          # (N, N)

    # Pooling transform: H = relu(X @ W_pool + b_pool)   -- MXU matmul, f32 acc.
    h = jnp.dot(x, wp_ref[...], preferred_element_type=jnp.float32) + bp_ref[...]
    h = jnp.maximum(h, 0.0)                   # (N, C)

    # Maxpool aggregation, matching:
    #   neighbor_features[i, j, :] = A[i, j] * H[j, :];  message = max over j.
    # Built as p[i, c, j] = A[i, j] * H[j, c] so A keeps its last dim on lanes
    # and the reduction is a plain lane (last-axis) max.
    h_t = h.T                                  # (C, N)
    p = a[:, None, :] * h_t[None, :, :]        # (N, C, N)
    message = jnp.max(p, axis=-1)              # (N, C)

    # Two output branches (note the module's swapped bias naming is preserved).
    left = jnp.dot(message, wn_ref[...], preferred_element_type=jnp.float32) + bs_ref[...]
    right = jnp.dot(x, ws_ref[...], preferred_element_type=jnp.float32) + bn_ref[...]

    # Single full-width (N, 2H) store: lane-dense (2H = 128) and sublane-dense (N = 8).
    o_ref[0] = jnp.concatenate([left, right], axis=-1).astype(o_ref.dtype)


def graphsage_cell_maxpool(X, A, w_pool, b_pool, w_neigh, w_self, b_self, b_neigh):
    """Pallas TPU implementation of GraphSAGE_cell.forward with 'maxpool' aggregation."""
    b, n, c = X.shape
    assert A.shape == (b, n, n)
    assert w_pool.shape == (c, c) and b_pool.shape == (1, c)
    hidden = w_self.shape[1]
    assert w_self.shape == (c, hidden) and w_neigh.shape == (c, hidden)
    assert b_self.shape == (1, hidden) and b_neigh.shape == (1, hidden)

    # TODO(synk): for large n, tile the node axis (extra grid dim) instead of
    # taking the full (n, n) adjacency block per step.
    grid = (b,)
    in_specs = [
        pl.BlockSpec((1, n, c), lambda i: (i, 0, 0)),      # X: one batch element/step
        pl.BlockSpec((1, n, n), lambda i: (i, 0, 0)),      # A: one batch element/step
        pl.BlockSpec((c, c), lambda i: (0, 0)),            # W_pool (resident)
        pl.BlockSpec((1, c), lambda i: (0, 0)),            # b_pool
        pl.BlockSpec((c, hidden), lambda i: (0, 0)),       # W_neighbors
        pl.BlockSpec((c, hidden), lambda i: (0, 0)),       # W_self
        pl.BlockSpec((1, hidden), lambda i: (0, 0)),       # b_self
        pl.BlockSpec((1, hidden), lambda i: (0, 0)),       # b_neighbors
    ]
    out_specs = pl.BlockSpec((1, n, 2 * hidden), lambda i: (i, 0, 0))

    return pl.pallas_call(
        _graphsage_maxpool_kernel,
        out_shape=jax.ShapeDtypeStruct((b, n, 2 * hidden), X.dtype),
        grid_spec=pltpu.PrefetchScalarGridSpec(
            num_scalar_prefetch=0,
            grid=grid,
            in_specs=in_specs,
            out_specs=out_specs,
        ),
        compiler_params=pltpu.CompilerParams(
            dimension_semantics=("parallel",),   # batch axis shards across TCs (v7x)
        ),
    )(X, A, w_pool, b_pool, w_neigh, w_self, b_self, b_neigh)


def _reference(X, A, w_pool, b_pool, w_neigh, w_self, b_self, b_neigh):
    """Pure-JAX reference mirroring the PyTorch forward (maxpool aggregation)."""
    hp = jnp.einsum("bnc,cd->bnd", X, w_pool, precision="highest") + b_pool
    H = jnp.maximum(hp, 0.0)                                   # (b, n, c)
    nf = H[:, None, :, :] * A[:, :, :, None]                   # (b, n, n, c)
    message = nf.max(axis=2)                                   # (b, n, c)
    left = jnp.einsum("bnc,ch->bnh", message, w_neigh, precision="highest") + b_self
    right = jnp.einsum("bnc,ch->bnh", X, w_self, precision="highest") + b_neigh
    return jnp.concatenate([left, right], axis=-1)


if __name__ == "__main__":
    key = jax.random.PRNGKey(0)
    b, n, c, hidden = 2, 8, 16, 64          # output last dim = 2*hidden = 128 (lane-dense)
    kx, ka, k1, k2, k3, k4, k5, k6 = jax.random.split(key, 8)

    X = jax.random.normal(kx, (b, n, c), dtype=jnp.float32)
    A = (jax.random.uniform(ka, (b, n, n)) < 0.4).astype(jnp.float32)  # dense 0/1 adjacency

    scale = (2.0 / c) ** 0.5                # kaiming-normal-style weight init
    w_pool = scale * jax.random.normal(k1, (c, c), dtype=jnp.float32)
    w_self = scale * jax.random.normal(k2, (c, hidden), dtype=jnp.float32)
    w_neigh = scale * jax.random.normal(k3, (c, hidden), dtype=jnp.float32)
    # Non-zero biases so the bias adds are actually exercised.
    b_pool = 0.1 * jax.random.normal(k4, (1, c), dtype=jnp.float32)
    b_self = 0.1 * jax.random.normal(k5, (1, hidden), dtype=jnp.float32)
    b_neigh = 0.1 * jax.random.normal(k6, (1, hidden), dtype=jnp.float32)

    out = graphsage_cell_maxpool(X, A, w_pool, b_pool, w_neigh, w_self, b_self, b_neigh)
    out = jax.block_until_ready(out)

    ref = _reference(X, A, w_pool, b_pool, w_neigh, w_self, b_self, b_neigh)
    assert out.shape == (b, n, 2 * hidden), out.shape
    assert out.dtype == X.dtype
    err = float(jnp.max(jnp.abs(out - ref)))
    assert jnp.allclose(out, ref, rtol=1e-3, atol=1e-3), f"max abs err {err}"

    print("KERNEL_OK")
</pallas_src>

<mosaic_0001>
module attributes {stable_mosaic.version = 11 : i64} {
  func.func @_graphsage_maxpool_kernel(%arg0: i32, %arg1: memref<1x8x16xf32, #tpu.memory_space<vmem>>, %arg2: memref<1x8x8xf32, #tpu.memory_space<vmem>>, %arg3: memref<16x16xf32, #tpu.memory_space<vmem>>, %arg4: memref<1x16xf32, #tpu.memory_space<vmem>>, %arg5: memref<16x64xf32, #tpu.memory_space<vmem>>, %arg6: memref<16x64xf32, #tpu.memory_space<vmem>>, %arg7: memref<1x64xf32, #tpu.memory_space<vmem>>, %arg8: memref<1x64xf32, #tpu.memory_space<vmem>>, %arg9: memref<1x8x128xf32, #tpu.memory_space<vmem>>) attributes {dimension_semantics = [#tpu.dimension_semantics<parallel>], iteration_bounds = array<i64: 2>, scalar_prefetch = 0 : i64, scratch_operands = 0 : i64, tpu.core_type = #tpu.core_type<tc>, window_params = [{transform_indices = @transform_0, window_bounds = array<i64: 1, 8, 16>}, {transform_indices = @transform_1, window_bounds = array<i64: 1, 8, 8>}, {pipeline_mode = #tpu.pipeline_mode<synchronous>, transform_indices = @transform_2, window_bounds = array<i64: 16, 16>}, {pipeline_mode = #tpu.pipeline_mode<synchronous>, transform_indices = @transform_3, window_bounds = array<i64: 1, 16>}, {pipeline_mode = #tpu.pipeline_mode<synchronous>, transform_indices = @transform_4, window_bounds = array<i64: 16, 64>}, {pipeline_mode = #tpu.pipeline_mode<synchronous>, transform_indices = @transform_5, window_bounds = array<i64: 16, 64>}, {pipeline_mode = #tpu.pipeline_mode<synchronous>, transform_indices = @transform_6, window_bounds = array<i64: 1, 64>}, {pipeline_mode = #tpu.pipeline_mode<synchronous>, transform_indices = @transform_7, window_bounds = array<i64: 1, 64>}, {transform_indices = @transform_8, window_bounds = array<i64: 1, 8, 128>}]} {
    %c0 = arith.constant 0 : index
    %c0_0 = arith.constant 0 : index
    %c0_1 = arith.constant 0 : index
    %0 = vector.load %arg1[%c0, %c0_0, %c0_1] : memref<1x8x16xf32, #tpu.memory_space<vmem>>, vector<1x8x16xf32>
    %1 = vector.shape_cast %0 : vector<1x8x16xf32> to vector<8x16xf32>
    %c0_2 = arith.constant 0 : index
    %c0_3 = arith.constant 0 : index
    %c0_4 = arith.constant 0 : index
    %2 = vector.load %arg2[%c0_2, %c0_3, %c0_4] : memref<1x8x8xf32, #tpu.memory_space<vmem>>, vector<1x8x8xf32>
    %3 = vector.shape_cast %2 : vector<1x8x8xf32> to vector<8x8xf32>
    %c0_5 = arith.constant 0 : index
    %c0_6 = arith.constant 0 : index
    %4 = vector.load %arg3[%c0_5, %c0_6] : memref<16x16xf32, #tpu.memory_space<vmem>>, vector<16x16xf32>
    %cst = arith.constant dense<0.000000e+00> : vector<8x16xf32>
    %5 = tpu.matmul %1, %4, %cst {dimension_numbers = #tpu.dot_dimension_numbers<[1], [0], [0], [1], [0, 0, 1, 1], [], []>} : vector<8x16xf32>, vector<16x16xf32>, vector<8x16xf32> -> vector<8x16xf32>
    %c0_7 = arith.constant 0 : index
    %c0_8 = arith.constant 0 : index
    %6 = vector.load %arg4[%c0_7, %c0_8] : memref<1x16xf32, #tpu.memory_space<vmem>>, vector<1x16xf32>
    %7 = vector.broadcast %6 : vector<1x16xf32> to vector<8x16xf32>
    %8 = arith.addf %5, %7 : vector<8x16xf32>
    %cst_9 = arith.constant 0.000000e+00 : f32
    %9 = vector.broadcast %cst_9 : f32 to vector<8x16xf32>
    %10 = arith.maximumf %8, %9 : vector<8x16xf32>
    %11 = tpu.transpose %10, [1, 0] : vector<8x16xf32> -> vector<16x8xf32>
    %12 = vector.shape_cast %3 : vector<8x8xf32> to vector<8x1x8xf32>
    %13 = vector.shape_cast %11 : vector<16x8xf32> to vector<1x16x8xf32>
    %14 = vector.broadcast %12 : vector<8x1x8xf32> to vector<8x16x8xf32>
    %15 = vector.broadcast %13 : vector<1x16x8xf32> to vector<8x16x8xf32>
    %16 = arith.mulf %14, %15 : vector<8x16x8xf32>
    %cst_10 = arith.constant dense<0xFF800000> : vector<8x16xf32>
    %17 = vector.multi_reduction <maximumf>, %16, %cst_10 [2] : vector<8x16x8xf32> to vector<8x16xf32>
    %c0_11 = arith.constant 0 : index
    %c0_12 = arith.constant 0 : index
    %18 = vector.load %arg5[%c0_11, %c0_12] : memref<16x64xf32, #tpu.memory_space<vmem>>, vector<16x64xf32>
    %cst_13 = arith.constant dense<0.000000e+00> : vector<8x64xf32>
    %19 = tpu.matmul %17, %18, %cst_13 {dimension_numbers = #tpu.dot_dimension_numbers<[1], [0], [0], [1], [0, 0, 1, 1], [], []>} : vector<8x16xf32>, vector<16x64xf32>, vector<8x64xf32> -> vector<8x64xf32>
    %c0_14 = arith.constant 0 : index
    %c0_15 = arith.constant 0 : index
    %20 = vector.load %arg7[%c0_14, %c0_15] : memref<1x64xf32, #tpu.memory_space<vmem>>, vector<1x64xf32>
    %21 = vector.broadcast %20 : vector<1x64xf32> to vector<8x64xf32>
    %22 = arith.addf %19, %21 : vector<8x64xf32>
    %c0_16 = arith.constant 0 : index
    %c0_17 = arith.constant 0 : index
    %23 = vector.load %arg6[%c0_16, %c0_17] : memref<16x64xf32, #tpu.memory_space<vmem>>, vector<16x64xf32>
    %cst_18 = arith.constant dense<0.000000e+00> : vector<8x64xf32>
    %24 = tpu.matmul %1, %23, %cst_18 {dimension_numbers = #tpu.dot_dimension_numbers<[1], [0], [0], [1], [0, 0, 1, 1], [], []>} : vector<8x16xf32>, vector<16x64xf32>, vector<8x64xf32> -> vector<8x64xf32>
    %c0_19 = arith.constant 0 : index
    %c0_20 = arith.constant 0 : index
    %25 = vector.load %arg8[%c0_19, %c0_20] : memref<1x64xf32, #tpu.memory_space<vmem>>, vector<1x64xf32>
    %26 = vector.broadcast %25 : vector<1x64xf32> to vector<8x64xf32>
    %27 = arith.addf %24, %26 : vector<8x64xf32>
    %28 = tpu.concatenate %22, %27 in 1 : vector<8x64xf32>, vector<8x64xf32> -> vector<8x128xf32>
    %c0_21 = arith.constant 0 : index
    %c0_22 = arith.constant 0 : index
    %c0_23 = arith.constant 0 : index
    %29 = vector.load %arg9[%c0_21, %c0_22, %c0_23] : memref<1x8x128xf32, #tpu.memory_space<vmem>>, vector<1x8x128xf32>
    %30 = vector.shape_cast %29 : vector<1x8x128xf32> to vector<8x128xf32>
    %31 = vector.shape_cast %28 : vector<8x128xf32> to vector<1x8x128xf32>
    tpu.vector_store %arg9[%c0_21, %c0_22, %c0_23], %31 {strides = array<i32>} : memref<1x8x128xf32, #tpu.memory_space<vmem>>, vector<1x8x128xf32>,
    return
  }
  func.func @transform_0(%arg0: i32) -> (i32, i32, i32) {
    %c0_i32 = arith.constant 0 : i32
    %c0_i32_0 = arith.constant 0 : i32
    %c0_i32_1 = arith.constant 0 : i32
    return %arg0, %c0_i32, %c0_i32_0 : i32, i32, i32
  }
  func.func @transform_1(%arg0: i32) -> (i32, i32, i32) {
    %c0_i32 = arith.constant 0 : i32
    %c0_i32_0 = arith.constant 0 : i32
    %c0_i32_1 = arith.constant 0 : i32
    return %arg0, %c0_i32, %c0_i32_0 : i32, i32, i32
  }
  func.func @transform_2(%arg0: i32) -> (i32, i32) {
    %c0_i32 = arith.constant 0 : i32
    %c0_i32_0 = arith.constant 0 : i32
    %c0_i32_1 = arith.constant 0 : i32
    return %c0_i32, %c0_i32_0 : i32, i32
  }
  func.func @transform_3(%arg0: i32) -> (i32, i32) {
    %c0_i32 = arith.constant 0 : i32
    %c0_i32_0 = arith.constant 0 : i32
    %c0_i32_1 = arith.constant 0 : i32
    return %c0_i32, %c0_i32_0 : i32, i32
  }
  func.func @transform_4(%arg0: i32) -> (i32, i32) {
    %c0_i32 = arith.constant 0 : i32
    %c0_i32_0 = arith.constant 0 : i32
    %c0_i32_1 = arith.constant 0 : i32
    return %c0_i32, %c0_i32_0 : i32, i32
  }
  func.func @transform_5(%arg0: i32) -> (i32, i32) {
    %c0_i32 = arith.constant 0 : i32
    %c0_i32_0 = arith.constant 0 : i32
    %c0_i32_1 = arith.constant 0 : i32
    return %c0_i32, %c0_i32_0 : i32, i32
  }
  func.func @transform_6(%arg0: i32) -> (i32, i32) {
    %c0_i32 = arith.constant 0 : i32
    %c0_i32_0 = arith.constant 0 : i32
    %c0_i32_1 = arith.constant 0 : i32
    return %c0_i32, %c0_i32_0 : i32, i32
  }
  func.func @transform_7(%arg0: i32) -> (i32, i32) {
    %c0_i32 = arith.constant 0 : i32
    %c0_i32_0 = arith.constant 0 : i32
    %c0_i32_1 = arith.constant 0 : i32
    return %c0_i32, %c0_i32_0 : i32, i32
  }
  func.func @transform_8(%arg0: i32) -> (i32, i32, i32) {
    %c0_i32 = arith.constant 0 : i32
    %c0_i32_0 = arith.constant 0 : i32
    %c0_i32_1 = arith.constant 0 : i32
    return %arg0, %c0_i32, %c0_i32_0 : i32, i32, i32
  }
}

</mosaic_0001>

<bundles_post_ra>
// kernel: tpu_custom_call.1
= control target key start
LH: loop header
LB: loop body
LE: loop exit
PB: predicated region body
PF: predicated region fallthrough
CT: control target
= control target key end

     0   :  { %s1783_s0 = inlined_call_operand.hbm [shape: f32[2,8,16], index: 0, kind: input, shape index: {}]   ;;  %s1784_s1 = inlined_call_operand.hbm [shape: f32[2,8,8], index: 1, kind: input, shape index: {}]   ;;  %s1785_s2 = inlined_call_operand.hbm [shape: f32[16,16], index: 2, kind: input, shape index: {}]   ;;  %s1786_s3 = inlined_call_operand.vmem [shape: f32[1,16], index: 3, kind: input, shape index: {}]   ;;  %s1787_s4 = inlined_call_operand.hbm [shape: f32[16,64], index: 4, kind: input, shape index: {}]   ;;  %s1788_s5 = inlined_call_operand.vmem [shape: f32[16,64], index: 5, kind: input, shape index: {}]   ;;  %s1789_s6 = inlined_call_operand.vmem [shape: f32[1,64], index: 6, kind: input, shape index: {}]   ;;  %s1790_s7 = inlined_call_operand.vmem [shape: f32[1,64], index: 7, kind: input, shape index: {}]   ;;  %s1791_s8 = inlined_call_operand.hbm [shape: f32[2,8,128], index: 8, kind: output, shape index: {}]  }
   0x1   :  { %1799 = sst [smem:[#allocation19_spill]] %s1785_s2 }
   0x2   :  { %1800 = sst [smem:[#allocation20_spill]] %s1787_s4 }
   0x3   :  { %13 = vsyncpa [#allocation3], 0 }
   0x4   :  { %15 = vsyncpa [#allocation3 + $0x1], 0 }
   0x5   :  { %16 = vsyncpa [#allocation6], 0 }
   0x6   :  { %18 = vsyncpa [#allocation6 + $0x1], 0 }
   0x7   :  { %19 = vsyncpa [#allocation9], 0 }
   0x8   :  { %20 = vsyncpa [#allocation4], 0 }
   0x9   :  { %22 = vsyncpa [#allocation4 + $0x1], 0  ;;  %s1456_s27 = smov 0   ;;  %s1458_s28 = smov 0  }
   0xa   :  { %s1460_s29 = smov 0   ;;  %s1462_s30 = smov 0  }
   0xb LB: > { %1801 = sst [smem:[#allocation16_spill]] %s1393_s29  ;;  %s1477_s9 = sadd.s32 4294967295, %s1397_s30   ;;  %s1397_s30 = sphi %s1462_s30, %s1822_s30   ;;  %s1393_s29 = sphi %s1460_s29, %s1824_s29   ;;  %s1389_s28 = sphi %s1458_s28, %s1826_s28   ;;  %s1385_s27 = sphi %s1456_s27, %s1825_s27  }
   0xc   : > { %s1059_s10 = sadd.s32 4294967294, %s1397_s30   ;;  %p48_p0 = scmp.ne.s32.totalorder %s1389_s28, %s1385_s27 }
   0xd   : > { %p1792_p1 = scmp.eq.s32.totalorder %s1477_s9, 0  ;;  %p230_p3 = scmp.eq.s32.totalorder %s1059_s10, 1 }
   0xe   : > { %p1060_p5 = scmp.ge.s32.totalorder %s1397_s30, 1  ;;  %p237_p7 = scmp.lt.s32.totalorder %s1397_s30, 3 }
   0xf   : > { %p1486_p4 = por %p1792_p1, %p48_p0  ;;  %p1491_p6 = por %p230_p3, %p48_p0 }
  0x10   : > { %p1496_p8 = pnand %p1060_p5, %p237_p7  ;;  %s1399_s14 = smov [#allocation7]  }
  0x11   : > { %s1802_s11 = scalar_select %p1486_p4, 1, 0 }
  0x12   : > { %s1803_s12 = scalar_select %p1491_p6, 1, 0 }
  0x13   : > { %s1804_s13 = scalar_select %p1496_p8, 1, 0 }
  0x14   : > { %s249_s15 = sshll.u32 %s1399_s14, 4  ;;  %p1137_p9 = pneg %p1496_p8  ;;  %s1500_s15 = int_to_ptr.vmem [resolvable:$true] %s249_s15 }
  0x15   : > { %s1400_s17 = smov [#allocation8]   ;;  %s1806_s2 = sld [smem:[#allocation19_spill]] }
  0x16   : > { %p1507_p11 = pnand %p1137_p9, %p1792_p1  ;;  %s265_s18 = sshll.u32 %s1400_s17, 4  ;;  %s1511_s18 = int_to_ptr.vmem [resolvable:$true] %s265_s18 }
  0x18   : > { %p1205_p13 = pneg %p1507_p11 }
  0x1b   : > { %s1203_s21 = scalar_lea.hbm %s1806_s2, 256 }
  0x1c   : > { %p1204_p12 = scmp.ne.s32.totalorder %s1806_s2, %s1203_s21  ;;  %p1210_p5 = scmp.lt.u32.totalorder %s1203_s21, %s1806_s2 }
  0x1e   : > { %p1206_p0 = pnand %p1205_p13, %p1204_p12 }
  0x20   : > { %p1207_p3 = pneg %p1206_p0 }
  0x22   : > { %p1212_p7 = pnand %p1210_p5, %p1207_p3 }
  0x24   : > { %1215 = shalt.err (!%p1212_p7)
}
  0x25   : > { %s1216_s26 = scalar_lea.vmem %s1500_s15, 256  ;;  %p1224_p2 = scmp.lt.s32.totalorder %s1500_s15, %s1500_s15 }
  0x26   : > { %p1217_p9 = scmp.ne.s32.totalorder %s1500_s15, %s1216_s26  ;;  %p1225_p12 = scmp.lt.s32.totalorder %s1216_s26, %s1216_s26 }
  0x28   : > { %p1219_p10 = pnand %p1217_p9, %p1205_p13  ;;  %p1226_p0 = por %p1225_p12, %p1224_p2 }
  0x2a   : > { %p1220_p1 = pneg %p1219_p10 }
  0x2c   : > { %p1227_p6 = pnand %p1226_p0, %p1220_p1 }
  0x2e   : > { %1230 = shalt.err (!%p1227_p6)
}
  0x2f   : > { %s1401_s10 = smov 128   ;;  %s1402_s14 = smov 8  }
  0x30   : > { %1140 = dma.hbm_to_vmem [thread:$0]  (!%p1507_p11), %s1806_s2, 256, %s1500_s15, [#allocation6], %s1401_s10, %s1401_s10, %s1402_s14  }
  0x31   : > { %s1807_s4 = sld [smem:[#allocation20_spill]] }
  0x37   : > { %s1231_s22 = scalar_lea.hbm %s1807_s4, 256 }
  0x38   : > { %p1232_p2 = scmp.ne.s32.totalorder %s1807_s4, %s1231_s22  ;;  %p1238_p10 = scmp.lt.u32.totalorder %s1231_s22, %s1807_s4 }
  0x3a   : > { %p1234_p1 = pnand %p1232_p2, %p1205_p13 }
  0x3c   : > { %p1235_p6 = pneg %p1234_p1 }
  0x3e   : > { %p1240_p3 = pnand %p1238_p10, %p1235_p6 }
  0x40   : > { %1243 = shalt.err (!%p1240_p3)
}
  0x41   : > { %s1244_s15 = scalar_lea.vmem %s1511_s18, 256  ;;  %p1252_p12 = scmp.lt.s32.totalorder %s1511_s18, %s1511_s18 }
  0x42   : > { %p1245_p5 = scmp.ne.s32.totalorder %s1511_s18, %s1244_s15  ;;  %p1253_p0 = scmp.lt.s32.totalorder %s1244_s15, %s1244_s15 }
  0x44   : > { %p1247_p7 = pnand %p1245_p5, %p1205_p13  ;;  %p1254_p2 = por %p1253_p0, %p1252_p12 }
  0x46   : > { %p1248_p9 = pneg %p1247_p7 }
  0x48   : > { %p1255_p1 = pnand %p1254_p2, %p1248_p9 }
  0x4a   : > { %1258 = shalt.err (!%p1255_p1)
}
  0x4b   : > { %1143 = dma.hbm_to_vmem [thread:$0]  (!%p1507_p11), %s1807_s4, 256, %s1511_s18, [#allocation9], %s1401_s10, %s1401_s10, %s1402_s14  }
  0x4c   : > { %s1566_s20 = sadd.s32 1, %s1397_s30   ;;  %s35_s16 = sadd.s32 1, %s1393_s29 }
  0x4d   : > { %1808 = sst [smem:[#allocation17_spill]] %s1566_s20  ;;  %s32_s21 = ssub.s32 %s1397_s30, %s1566_s20 }
  0x4e   : > { %p42_p13 = scmp.ne.s32.totalorder %s1393_s29, %s1389_s28  ;;  %p33_p6 = scmp.eq.s32.totalorder %s32_s21, 0 }
  0x4f   : > { %p43_p10 = scmp.eq.s32.totalorder %s1397_s30, 0  ;;  %p1809_p3 = scmp.eq.s32.totalorder %s1477_s9, 1 }
  0x50   : > { %p1157_p7 = scmp.lt.s32.totalorder %s1397_s30, 2  ;;  %s288_s24 = sand.u32 1, %s1393_s29  }
  0x51   : > { %p1576_p5 = por %p1809_p3, %p42_p13  ;;  %p44_p9 = por %p43_p10, %p42_p13 }
  0x52   : > { %s1582_s23 = scalar_select %p33_p6, %s1393_s29, %s35_s16  }
  0x53   : > { %s1810_s22 = scalar_select %p1576_p5, 1, 0 }
  0x54   : > { %1811 = sst [smem:[#allocation18_spill]] %s1582_s23  ;;  %s1585_s18 = sshll.u32 %s288_s24, 3 }
  0x55   : > { %s1065_s10 = sshll.u32 %s1397_s30, 7  ;;  %s292_s15 = scalar_lea.vmem [#allocation2], %s1585_s18 }
  0x56   : > { %s1591_s26 = scalar_lea.hbm %s1783_s0, %s1065_s10  ;;  %s299_s17 = sshll.u32 %s292_s15, 4  ;;  %s1594_s17 = int_to_ptr.vmem [resolvable:$true] %s299_s17 }
  0x57   : > { %p1596_p11 = pnand %p1157_p7, %p44_p9  ;;  %s1603_s14 = scalar_lea.hbm %s1784_s1, %s1065_s10 }
  0x58   : > { %s306_s25 = sand.u32 1, %s1397_s30   ;;  %s289_s2 = scalar_lea.sflag [#allocation3], %s288_s24 }
  0x59   : > { %s1259_s4 = scalar_lea.hbm %s1591_s26, 128  ;;  %p1261_p0 = pneg %p1596_p11 }
  0x5a   : > { %p1260_p12 = scmp.ne.s32.totalorder %s1591_s26, %s1259_s4  ;;  %s1264_s29 = scalar_lea.hbm %s1783_s0, 256 }
  0x5b   : > { %p1265_p13 = scmp.lt.u32.totalorder %s1591_s26, %s1783_s0  ;;  %p1266_p6 = scmp.lt.u32.totalorder %s1264_s29, %s1259_s4 }
  0x5c   : > { %p1262_p2 = pnand %p1261_p0, %p1260_p12  ;;  %p1268_p3 = scmp.lt.u32.totalorder %s1259_s4, %s1591_s26 }
  0x5d   : > { %p1267_p10 = por %p1266_p6, %p1265_p13 }
  0x5e   : > { %p1263_p1 = pneg %p1262_p2 }
  0x5f   : > { %p1269_p7 = por %p1268_p3, %p1267_p10 }
  0x61   : > { %p1270_p9 = pnand %p1269_p7, %p1263_p1 }
  0x63   : > { %1273 = shalt.err (!%p1270_p9)
}
  0x64   : > { %s1274_s24 = scalar_lea.vmem %s1594_s17, 128  ;;  %s1403_s23 = smov [#allocation2]  }
  0x65   : > { %p1275_p12 = scmp.ne.s32.totalorder %s1594_s17, %s1274_s24  ;;  %s1279_s10 = sshll.u32 %s1403_s23, 4  ;;  %s1280_s10 = int_to_ptr.vmem [resolvable:$false] %s1279_s10 }
  0x66   : > { %s1281_s20 = scalar_lea.vmem %s1280_s10, 256  ;;  %p1282_p4 = scmp.lt.s32.totalorder %s1594_s17, %s1280_s10 }
  0x67   : > { %p1277_p2 = pnand %p1275_p12, %p1261_p0  ;;  %p1283_p13 = scmp.lt.s32.totalorder %s1281_s20, %s1274_s24 }
  0x69   : > { %p1278_p5 = pneg %p1277_p2  ;;  %p1284_p6 = por %p1283_p13, %p1282_p4 }
  0x6b   : > { %p1285_p10 = pnand %p1284_p6, %p1278_p5 }
  0x6d   : > { %1288 = shalt.err (!%p1285_p10)
}
  0x6e   : > { %1147 = dma.hbm_to_vmem [thread:$0]  (!%p1596_p11), %s1591_s26, 128, %s1594_s17, %s289_s2  }
  0x6f   : > { %s310_s4 = scalar_lea.vmem [#allocation5], %s1585_s18  ;;  %s307_s21 = scalar_lea.sflag [#allocation6], %s306_s25 }
  0x70   : > { %s317_s29 = sshll.u32 %s310_s4, 4  ;;  %s1289_s15 = scalar_lea.hbm %s1603_s14, 128  ;;  %s318_s29 = int_to_ptr.vmem [resolvable:$true] %s317_s29 }
  0x71   : > { %p1290_p4 = scmp.ne.s32.totalorder %s1603_s14, %s1289_s15  ;;  %s1294_s23 = scalar_lea.hbm %s1784_s1, 256 }
  0x72   : > { %p1295_p3 = scmp.lt.u32.totalorder %s1603_s14, %s1784_s1  ;;  %p1296_p7 = scmp.lt.u32.totalorder %s1294_s23, %s1289_s15 }
  0x73   : > { %p1292_p5 = pnand %p1290_p4, %p1261_p0  ;;  %p1298_p12 = scmp.lt.u32.totalorder %s1289_s15, %s1603_s14 }
  0x74   : > { %p1297_p9 = por %p1296_p7, %p1295_p3 }
  0x75   : > { %p1293_p1 = pneg %p1292_p5 }
  0x76   : > { %p1299_p2 = por %p1298_p12, %p1297_p9 }
  0x78   : > { %p1300_p13 = pnand %p1299_p2, %p1293_p1 }
  0x7a   : > { %1303 = shalt.err (!%p1300_p13)
}
  0x7b   : > { %s1304_s2 = scalar_lea.vmem %s318_s29, 128  ;;  %s1404_s18 = smov [#allocation5]  }
  0x7c   : > { %p1305_p6 = scmp.ne.s32.totalorder %s318_s29, %s1304_s2  ;;  %s1309_s26 = sshll.u32 %s1404_s18, 4  ;;  %s1310_s26 = int_to_ptr.vmem [resolvable:$false] %s1309_s26 }
  0x7d   : > { %s1311_s17 = scalar_lea.vmem %s1310_s26, 256  ;;  %p1312_p5 = scmp.lt.s32.totalorder %s318_s29, %s1310_s26 }
  0x7e   : > { %p1307_p10 = pnand %p1305_p6, %p1261_p0  ;;  %p1313_p8 = scmp.lt.s32.totalorder %s1311_s17, %s1304_s2 }
  0x80   : > { %p1308_p4 = pneg %p1307_p10  ;;  %p1314_p3 = por %p1313_p8, %p1312_p5 }
  0x82   : > { %p1315_p7 = pnand %p1314_p3, %p1308_p4 }
  0x84   : > { %1318 = shalt.err (!%p1315_p7)
}
  0x85   : > { %1150 = dma.hbm_to_vmem [thread:$0]  (!%p1596_p11), %s1603_s14, 128, %s318_s29, %s307_s21  }
  0x86   : > { %p1813_p1 = scmp.ne.s32.totalorder %s1804_s13, 0 }
  0x87   : > { %s1656_s25 = sand.u32 (!%p1813_p1), 1, %s1389_s28   ;;  %p1814_p8 = scmp.ne.s32.totalorder (!%p1813_p1), %s1802_s11, 0 }
  0x88   : > { %326 = sbr.rel (%p1813_p1) target bundleno = 936 (0x3a8), region = 52  ;;  %s1659_s4 = sshll.u32 (!%p1813_p1), %s1656_s25, 3 }
  0x89   : > { %s329_s15 = scalar_lea.sflag (!%p1813_p1), [#allocation3], %s1656_s25  ;;  %s332_s16 = scalar_lea.vmem (!%p1813_p1), [#allocation2], %s1659_s4 }
  0x8f   : > { %1364 = dma.done.wait (%p1814_p8), %s329_s15, 128  }
  0x90   : > { %1366 = vsyncadd (%p1814_p8), %s329_s15, 4294967168  ;;  %s337_s13 = sand.u32 1, %s1477_s9   ;;  %s341_s14 = scalar_lea.vmem [#allocation5], %s1659_s4 }
  0x91   : > { %s338_s19 = scalar_lea.sflag [#allocation6], %s337_s13 }
  0x92   : > { %1368 = dma.done.wait (%p1814_p8), %s338_s19, 128  }
  0x93   : > { %1370 = vsyncadd (%p1814_p8), %s338_s19, 4294967168  ;;  %p1815_p11 = scmp.eq.s32.totalorder %s1477_s9, 0 }
  0x95   : > { %1372 = dma.done.wait (%p1815_p11), [#allocation6], 256   ;;  %p1816_p0 = pmov %p1815_p11 }
  0x97   : > { %1374 = vsyncadd (%p1816_p0), [#allocation6], 4294967040  ;;  %p1817_p9 = pmov %p1816_p0 }
  0x98   : > { %p1818_p12 = pmov %p1816_p0 }
  0x99   : > { %1376 = dma.done.wait (%p1817_p9), [#allocation9], 256  }
  0x9a   : > { %1378 = vsyncadd (%p1818_p12), [#allocation9], 4294967040  ;;  %v1405_v0 = vmov 0.0|0.0   ;;  %vm1406_vm0 = vmmov 0   ;;  %v1407_v1 = vmov 0.0   ;;  %v389_v2 = vld [vmem:[#allocation7] sm:$0xff]  ;;  %v510_v16 = vlaneseq }
  0x9b   : > { %1114 = vmatprep.subr.bf16.mxu0 %v1405_v0  ;;  %1097 = vmatprep.mubr.msk.f32.mxu0 %vm1406_vm0, %v1407_v1  ;;  %v390_v3 = vld [vmem:[#allocation7 + $0x8] sm:$0xff]  ;;  %vm398_vm1 = vcmask 130048   ;;  %v1074_v6 = vld [vmem:[%s1786_s3] ss:$0 sm:$0xff]  ;;  %v1408_v14 = vmov 1966171168  }
  0x9c   : > { %1117 = vmatprep.subr.bf16.mxu1 %v1405_v0  ;;  %1104 = vmatprep.mubr.msk.f32.mxu1 %vm1406_vm0, %v1407_v1  ;;  %v1115_v4 = vpack.c.bf16 %v390_v3, %v389_v2  ;;  %v387_v5 = vld [vmem:[%s332_s16] sm:$0xff]  ;;  %v508_v15 = vunpack.c.l.s4 %v1408_v14  ;;  %v1693_v18 = vshrl.u32 %v510_v16, 7  ;;  %v388_v19 = vld [vmem:[%s341_s14] sm:$0xff]  ;;  %vm611_vm2 = vcmask 64512   ;;  %s1409_s18 = smov 64   ;;  %s1081_s15 = sshll.u32 %s1477_s9, 7 }
  0x9d   : > { %v847_v11 = vld [vmem:[%s1788_s5] sm:$0xff]  ;;  %v848_v12 = vld [vmem:[%s1788_s5 + $0x8] sm:$0xff]  ;;  %v506_v21 = vcombine.high %v388_v19, %v388_v19  ;;  %v661_v14 = vld [vmem:[#allocation8 + $0x8] sm:$0xff]  ;;  %vm696_vm3 = vcmask 130112   ;;  %vm761_vm4 = vcmask 1041409   ;;  %vm763_vm5 = vcmask 1042434   ;;  %s1739_s11 = scalar_lea.hbm %s1791_s8, %s1081_s15 }
  0x9e   : > { %1116 = vmatpush3.bf16.msra.mxu0 %v1115_v4  ;;  %v1121_v13 = vpack.c.bf16 %v848_v12, %v847_v11  ;;  %v509_v17 = vunpack.c.0.s8 %v508_v15  ;;  %v557_v27 = vsub.s32 0, %v1693_v18  ;;  %vm765_vm6 = vcmask 1043459   ;;  %s386_s16 = scalar_lea.vmem [#allocation10], %s1659_s4  ;;  %s934_s9 = scalar_lea.sflag [#allocation4], %s1656_s25 }
  0x9f   : > { %1120 = vmatprep.subr.bf16.mxu0 %v1405_v0  ;;  %vm767_vm7 = vcmask 1044484   ;;  %vm769_vm8 = vcmask 1045509   ;;  %vm771_vm9 = vcmask 1046534   ;;  %vm773_vm10 = vcmask 1047559   ;;  %s947_s13 = sshll.u32 %s386_s16, 4  ;;  %p1819_p13 = scmp.ne.s32.totalorder %s1810_s22, 0  ;;  %s1741_s13 = int_to_ptr.vmem [resolvable:$true] %s947_s13 }
  0xa0   : > { %v512_v20 = vsub.s32 %v509_v17, %v1693_v18  ;;  %v1078_v17 = vld [vmem:[%s1790_s7] ss:$0 sm:$0xff]  ;;  %vm930_vm11 = vcmask 523264   ;;  %s1319_s4 = scalar_lea.vmem %s1741_s13, 128  ;;  %s1410_s29 = smov [#allocation10]  }
  0xa1   : > { %1098 = vmatmul.mubr.msk.f32.vlgmr.msra.gmra.mrb[0].mxu0 %vm398_vm1, %v387_v5  ;;  %p1320_p2 = scmp.ne.s32.totalorder %s1741_s13, %s1319_s4  ;;  %s1323_s21 = sshll.u32 %s1410_s29, 4  ;;  %s1324_s21 = int_to_ptr.vmem [resolvable:$false] %s1323_s21 }
  0xa2   : > { %1111 = vmatprep.mubr.msk.f32.mxu0 %vm1406_vm0, %v1407_v1  ;;  %1122 = vmatpush3.bf16.msra.mxu0 %v1121_v13  ;;  %v513_v22 = vrot.slane %v388_v19, %v512_v20  ;;  %v520_v23 = vrot.slane %v506_v21, %v512_v20  ;;  %v660_v13 = vld [vmem:[#allocation8] sm:$0xff]  ;;  %s1325_s24 = scalar_lea.vmem %s1324_s21, 256  ;;  %p1326_p4 = scmp.lt.s32.totalorder %s1741_s13, %s1324_s21 }
  0xa3   : > { %v1118_v15 = vpack.c.bf16 %v661_v14, %v660_v13  ;;  %p1321_p6 = pnand %p1320_p2, %p1819_p13  ;;  %p1327_p5 = scmp.lt.s32.totalorder %s1325_s24, %s1319_s4 }
  0xa4   : > { %v521_v24 = vcombine.high %v513_v22, %v513_v22  ;;  %v529_v25 = vrot.slane %v513_v22, %v512_v20  ;;  %v522_v26 = vcombine.high %v520_v23, %v520_v23  ;;  %v536_v45 = vrot.slane %v520_v23, %v512_v20 }
  0xa5   : > { %1112 = vmatmul.mubr.msk.f32.vlgmr.msra.gmra.mrb[2].mxu0 %vm398_vm1, %v387_v5  ;;  %1119 = vmatpush3.bf16.msra.mxu1 %v1118_v15  ;;  %p1322_p10 = pneg %p1321_p6  ;;  %p1328_p3 = por %p1327_p5, %p1326_p4 }
  0xa6   : > { %v543_v28 = vrot.slane %v521_v24, %v512_v20  ;;  %v551_v29 = vcombine.high %v529_v25, %v529_v25  ;;  %v550_v30 = vrot.slane %v522_v26, %v512_v20  ;;  %v558_v32 = vrot.slane %v529_v25, %v557_v27 }
  0xa7   : > { %v574_v49 = vrot.slane %v536_v45, %v557_v27  ;;  %v552_v54 = vcombine.high %v536_v45, %v536_v45  ;;  %p1329_p7 = pnand %p1328_p3, %p1322_p10 }
  0xa8   : > { %v562_v31 = vrot.slane %v543_v28, %v557_v27  ;;  %v553_v33 = vcombine.high %v543_v28, %v543_v28  ;;  %v566_v34 = vrot.slane %v551_v29, %v557_v27  ;;  %v554_v35 = vcombine.high %v550_v30, %v550_v30 }
  0xa9   : > { %v578_v53 = vrot.slane %v550_v30, %v557_v27  ;;  %v582_v57 = vrot.slane %v552_v54, %v557_v27 }
  0xaa   : > { %v570_v39 = vrot.slane %v553_v33, %v557_v27  ;;  %v586_v43 = vrot.slane %v554_v35, %v557_v27 }
 0x174   : > { %v468_v7 = vpop.f32.mrb[0].mxu0 }
 0x175   : > { %v1099_v8 = vpop.f32.mrb[1].mxu0  ;;  %v469_v9 = vadd.f32 %v1074_v6, %v468_v7 }
 0x177   : > { %v472_v10 = vmax.f32 %v469_v9, 0.0 }
 0x178   : > { %v922_v20 = vpop.f32.mrb[2].mxu0 }
 0x179   : > { %473 = vxpose.xlu0.b32.start.end [1/1] (short) (narrow) %v472_v10, 16  ;;  %v923_v21 = vadd.f32 %v1078_v17, %v922_v20  ;;  %v1113_v22 = vpop.f32.mrb[3].mxu0 }
 0x1f9   : > { %v489_v36 = vpop.trf.xlu0 }
 0x1fa   : > { %v597_v37 = vmul.f32 %v562_v31, %v489_v36  ;;  %v595_v38 = vmul.f32 %v558_v32, %v489_v36  ;;  %v599_v42 = vmul.f32 %v566_v34, %v489_v36  ;;  %v601_v48 = vmul.f32 %v570_v39, %v489_v36 }
 0x1fb   : > { %v603_v52 = vmul.f32 %v574_v49, %v489_v36  ;;  %v605_v56 = vmul.f32 %v578_v53, %v489_v36  ;;  %v607_v59 = vmul.f32 %v582_v57, %v489_v36  ;;  %v609_v11 = vmul.f32 %v586_v43, %v489_v36 }
 0x1fc   : > { %v618_v40 = vsel %vm611_vm2, %v597_v37, -inf  ;;  %v612_v41 = vsel %vm611_vm2, %v595_v38, -inf  ;;  %v624_v47 = vsel %vm611_vm2, %v599_v42, -inf  ;;  %v630_v51 = vsel %vm611_vm2, %v601_v48, -inf }
 0x1fd   : > { %619 = vmax.xlane.f32.xlu1 %v618_v40  ;;  %613 = vmax.xlane.f32.xlu0 %v612_v41  ;;  %v490_v44 = vpop.trf.xlu0  ;;  %v636_v55 = vsel %vm611_vm2, %v603_v52, -inf  ;;  %v642_v58 = vsel %vm611_vm2, %v605_v56, -inf  ;;  %v648_v61 = vsel %vm611_vm2, %v607_v59, -inf  ;;  %v654_v12 = vsel %vm611_vm2, %v609_v11, -inf }
 0x1fe   : > { %v610_v46 = vmul.f32 %v586_v43, %v490_v44  ;;  %v596_v60 = vmul.f32 %v558_v32, %v490_v44  ;;  %v598_v63 = vmul.f32 %v562_v31, %v490_v44  ;;  %v600_v1 = vmul.f32 %v566_v34, %v490_v44 }
 0x1ff   : > { %v602_v3 = vmul.f32 %v570_v39, %v490_v44  ;;  %v604_v5 = vmul.f32 %v574_v49, %v490_v44  ;;  %v606_v7 = vmul.f32 %v578_v53, %v490_v44  ;;  %v608_v9 = vmul.f32 %v582_v57, %v490_v44 }
 0x200   : > { %v657_v50 = vsel %vm611_vm2, %v610_v46, -inf  ;;  %v615_v62 = vsel %vm611_vm2, %v596_v60, -inf  ;;  %v621_v0 = vsel %vm611_vm2, %v598_v63, -inf  ;;  %v627_v2 = vsel %vm611_vm2, %v600_v1, -inf }
 0x201   : > { %625 = vmax.xlane.f32.xlu1 %v624_v47  ;;  %658 = vmax.xlane.f32.xlu0 %v657_v50  ;;  %v633_v4 = vsel %vm611_vm2, %v602_v3, -inf  ;;  %v639_v6 = vsel %vm611_vm2, %v604_v5, -inf  ;;  %v645_v8 = vsel %vm611_vm2, %v606_v7, -inf  ;;  %v651_v10 = vsel %vm611_vm2, %v608_v9, -inf  ;;  %v1076_v7 = vld [vmem:[%s1789_s6] ss:$0 sm:$0xff] }
 0x202   : > { %v686_v31 = vand.u32 127, %v510_v16 }
 0x204   : > { %v691_v33 = vadd.s32 4294967288, %v686_v31  ;;  %v689_v35 = vsub.s32 %v686_v31, %v1693_v18 }
 0x205   : > { %631 = vmax.xlane.f32.xlu1 %v630_v51 }
 0x206   : > { %v694_v36 = vsub.s32 %v691_v33, %v1693_v18 }
 0x209   : > { %637 = vmax.xlane.f32.xlu1 %v636_v55 }
 0x20d   : > { %643 = vmax.xlane.f32.xlu1 %v642_v58 }
 0x211   : > { %649 = vmax.xlane.f32.xlu1 %v648_v61 }
 0x215   : > { %616 = vmax.xlane.f32.xlu1 %v615_v62 }
 0x219   : > { %622 = vmax.xlane.f32.xlu1 %v621_v0 }
 0x21d   : > { %628 = vmax.xlane.f32.xlu1 %v627_v2 }
 0x221   : > { %634 = vmax.xlane.f32.xlu1 %v633_v4 }
 0x225   : > { %640 = vmax.xlane.f32.xlu1 %v639_v6 }
 0x229   : > { %646 = vmax.xlane.f32.xlu1 %v645_v8 }
 0x22d   : > { %652 = vmax.xlane.f32.xlu1 %v651_v10 }
 0x231   : > { %655 = vmax.xlane.f32.xlu1 %v654_v12 }
 0x242   : > { %927 = vrot.lane.b32.xlu1 %v923_v21, %s1409_s18 }
 0x28a   : > { %v620_v19 = vpop.xlane.xlu1 %619  ;;  %v614_v38 = vpop.xlane.xlu0 %613 }
 0x28b   : > { %v701_v41 = vrot.slane %v620_v19, %v689_v35  ;;  %v690_v46 = vrot.slane %v614_v38, %v689_v35 }
 0x28e   : > { %v626_v23 = vpop.xlane.xlu1 %625  ;;  %v659_v56 = vpop.xlane.xlu0 %658 }
 0x28f   : > { %v710_v44 = vrot.slane %v626_v23, %v689_v35  ;;  %v759_v0 = vrot.slane %v659_v56, %v694_v36 }
 0x292   : > { %v632_v24 = vpop.xlane.xlu1 %631 }
 0x293   : > { %v719_v16 = vrot.slane %v632_v24, %v689_v35 }
 0x296   : > { %v638_v25 = vpop.xlane.xlu1 %637 }
 0x297   : > { %v728_v49 = vrot.slane %v638_v25, %v689_v35 }
 0x29a   : > { %v644_v26 = vpop.xlane.xlu1 %643 }
 0x29b   : > { %v737_v51 = vrot.slane %v644_v26, %v689_v35 }
 0x29e   : > { %v650_v27 = vpop.xlane.xlu1 %649 }
 0x29f   : > { %v746_v55 = vrot.slane %v650_v27, %v689_v35 }
 0x2a2   : > { %v617_v28 = vpop.xlane.xlu1 %616 }
 0x2a3   : > { %v695_v42 = vrot.slane %v617_v28, %v694_v36 }
 0x2a5   : > { %v697_v52 = vsel %vm696_vm3, %v695_v42, %v690_v46 }
 0x2a6   : > { %v623_v29 = vpop.xlane.xlu1 %622 }
 0x2a7   : > { %v705_v37 = vrot.slane %v623_v29, %v694_v36 }
 0x2a9   : > { %v706_v47 = vsel %vm696_vm3, %v705_v37, %v701_v41 }
 0x2aa   : > { %v629_v30 = vpop.xlane.xlu1 %628  ;;  %v762_v57 = vsel %vm761_vm4, %v706_v47, %v697_v52 }
 0x2ab   : > { %v714_v39 = vrot.slane %v629_v30, %v694_v36 }
 0x2ad   : > { %v715_v18 = vsel %vm696_vm3, %v714_v39, %v710_v44 }
 0x2ae   : > { %v635_v32 = vpop.xlane.xlu1 %634  ;;  %v764_v59 = vsel %vm763_vm5, %v715_v18, %v762_v57 }
 0x2af   : > { %v723_v43 = vrot.slane %v635_v32, %v694_v36 }
 0x2b1   : > { %v724_v53 = vsel %vm696_vm3, %v723_v43, %v719_v16 }
 0x2b2   : > { %v641_v34 = vpop.xlane.xlu1 %640  ;;  %v766_v61 = vsel %vm765_vm6, %v724_v53, %v764_v59 }
 0x2b3   : > { %v732_v45 = vrot.slane %v641_v34, %v694_v36 }
 0x2b5   : > { %v733_v58 = vsel %vm696_vm3, %v732_v45, %v728_v49 }
 0x2b6   : > { %v647_v40 = vpop.xlane.xlu1 %646  ;;  %v768_v1 = vsel %vm767_vm7, %v733_v58, %v766_v61 }
 0x2b7   : > { %v741_v48 = vrot.slane %v647_v40, %v694_v36 }
 0x2b9   : > { %v742_v60 = vsel %vm696_vm3, %v741_v48, %v737_v51 }
 0x2ba   : > { %v653_v50 = vpop.xlane.xlu1 %652  ;;  %v770_v3 = vsel %vm769_vm8, %v742_v60, %v768_v1 }
 0x2bb   : > { %v750_v54 = vrot.slane %v653_v50, %v694_v36 }
 0x2bd   : > { %v751_v62 = vsel %vm696_vm3, %v750_v54, %v746_v55 }
 0x2be   : > { %v656_v63 = vpop.xlane.xlu1 %655  ;;  %v772_v5 = vsel %vm771_vm9, %v751_v62, %v770_v3 }
 0x2bf   : > { %v755_v2 = vrot.slane %v656_v63, %v689_v35 }
 0x2c1   : > { %v760_v4 = vsel %vm696_vm3, %v759_v0, %v755_v2 }
 0x2c2   : > { %v774_v6 = vsel %vm773_vm10, %v760_v4, %v772_v5  ;;  %v928_v9 = vpop.permute.xlu1 %927 }
 0x2c3   : > { %1105 = vmatmul.mubr.msk.f32.vlgmr.msra.gmra.mrb[0].mxu1 %vm398_vm1, %v774_v6 }
 0x396   : > { %v843_v8 = vpop.f32.mrb[0].mxu1 }
 0x397   : > { %v844_v10 = vadd.f32 %v1076_v7, %v843_v8  ;;  %v1106_v11 = vpop.f32.mrb[1].mxu1 }
 0x399   : > { %v931_v12 = vsel %vm930_vm11, %v844_v10, %v928_v9 }
 0x39a   : > { %932 = vst [vmem:[%s386_s16] sm:$0xff] %v931_v12 }
 0x39b   : > { %1332 = shalt.err (!%p1329_p7)
}
 0x39c   : > { %s1333_s25 = scalar_lea.hbm %s1739_s11, 128  ;;  %s1337_s20 = scalar_lea.hbm %s1791_s8, 256 }
 0x39d   : > { %p1334_p1 = scmp.ne.s32.totalorder %s1739_s11, %s1333_s25  ;;  %p1338_p0 = scmp.lt.u32.totalorder %s1739_s11, %s1791_s8 }
 0x39e   : > { %p1339_p9 = scmp.lt.u32.totalorder %s1337_s20, %s1333_s25  ;;  %p1341_p2 = scmp.lt.u32.totalorder %s1333_s25, %s1739_s11 }
 0x39f   : > { %p1335_p8 = pnand %p1334_p1, %p1819_p13 }
 0x3a0   : > { %p1340_p12 = por %p1339_p9, %p1338_p0 }
 0x3a1   : > { %p1336_p11 = pneg %p1335_p8 }
 0x3a2   : > { %p1342_p6 = por %p1341_p2, %p1340_p12 }
 0x3a4   : > { %p1343_p10 = pnand %p1342_p6, %p1336_p11 }
 0x3a6   : > { %1346 = shalt.err (!%p1343_p10)
}
 0x3a7   : > { %1135 = dma.vmem_to_hbm [thread:$0]  (%p1819_p13), %s1741_s13, 128, %s1739_s11, %s934_s9  }
 0x3a8 PF: > { %s959_s26 = sand.u32 1, %s1385_s27   ;;  %p1820_p4 = scmp.ne.s32.totalorder %s1803_s12, 0 }
 0x3a9   : > { %p1821_p5 = scmp.ge.s32.totalorder %s1397_s30, 2  ;;  %s960_s17 = scalar_lea.sflag [#allocation4], %s959_s26 }
 0x3ab   : > { %p1152_p3 = pnand %p1821_p5, %p1820_p4 }
 0x3ad   : > { %1380 = dma.done.wait (!%p1152_p3), %s960_s17, 128  }
 0x3ae   : > { %1382 = vsyncadd (!%p1152_p3), %s960_s17, 4294967168  ;;  %s1822_s30 = sld [smem:[#allocation17_spill]]  ;;  %s1823_s15 = sld [smem:[#allocation16_spill]] }
 0x3af   : > { %s1824_s29 = sld [smem:[#allocation18_spill]]  ;;  %s1825_s27 = smov %s1389_s28 }
 0x3b4   : > { %p25_p7 = scmp.ge.s32.totalorder %s1822_s30, 4   ;;  %s1826_s28 = smov %s1823_s15 }
 0x3b6   :  { %27 = sbr.rel (!%p25_p7) target bundleno = 11 (0xb), region = 118 }
 0x3bd   :  { %965 = vsyncpa [#allocation3], 1 }
 0x3be   :  { %967 = vsyncpa [#allocation3 + $0x1], 1 }
 0x3bf   :  { %968 = vsyncpa [#allocation6], 1 }
 0x3c0   :  { %970 = vsyncpa [#allocation6 + $0x1], 1 }
 0x3c1   :  { %971 = vsyncpa [#allocation9], 1 }
 0x3c2   :  { %972 = vsyncpa [#allocation4], 1 }
 0x3c3   :  { %974 = vsyncpa [#allocation4 + $0x1], 1 }

</bundles_post_ra>
